<compile_context>
chip_gen: v7x
topology: tpu7x:2x2x1
jax: 0.10.0
libtpu: 0.0.40
codegen_flags: <defaults>
</compile_context>

<pallas_src>
import jax
import jax.numpy as jnp
from jax import lax
from jax.experimental import pallas as pl
from jax.experimental.pallas import tpu as pltpu


def _sublane(dtype):
    # sublane tile height: 8 rows for 32-bit, 16 rows for 16-bit packed dtypes
    return 8 * (4 // jnp.dtype(dtype).itemsize)


def _round_up(x, m):
    return (x + m - 1) // m * m


def _pick_images_per_step(n, cap=8):
    """Largest divisor of n that still leaves >=2 grid steps (v7x megacore)."""
    if n <= 1:
        return 1
    target = max(1, min(cap, n // 2))
    for nb in range(target, 0, -1):
        if n % nb == 0:
            return nb
    return 1


def _make_fused_kernel(H, W, NB, chans, chans_pad, compute_dtype):
    """Fused n-layer conv3x3+bias+ReLU kernel; NB images per grid step."""
    HW = H * W
    L = NB * HW
    n_layers = len(chans) - 1
    # Tap order matches the wrapper's weight flattening: t = kh*3 + kw.
    taps = [(kh - 1, kw - 1) for kh in range(3) for kw in range(3)]

    def kernel(*refs):
        x_ref = refs[0]                        # (NB, C0, HW)
        wb = refs[1:1 + 2 * n_layers]          # (w_l, b_l) pairs
        o_ref = refs[1 + 2 * n_layers]         # (NB, Cn, HW)
        patches = refs[2 + 2 * n_layers:]      # per layer: (9*Cin_pad, L)

        # Per-tap boundary masks, built once per step and shared by all layers.
        # p is the position inside one image, w_idx the column inside one row.
        lane = lax.broadcasted_iota(jnp.int32, (1, L), 1)
        p = lane % HW
        w_idx = lane % W
        ones = jnp.ones((1, L), jnp.bool_)

        def tap_mask(dh, dw):
            mh = ones if dh == 0 else (p < (H - 1) * W if dh == 1 else p >= W)
            mw = ones if dw == 0 else (w_idx < (W - 1) if dw == 1 else w_idx > 0)
            return (mh & mw).astype(compute_dtype)

        masks = {t: tap_mask(*t) for t in taps if t != (0, 0)}

        # Layer-0 input: lane-concatenate the NB images -> (C0, NB*HW).
        if NB == 1:
            y = x_ref[0]
        else:
            y = jnp.concatenate([x_ref[n] for n in range(NB)], axis=-1)

        for l in range(n_layers):
            cin, cin_pad = chans[l], chans_pad[l]
            w_ref, b_ref = wb[2 * l], wb[2 * l + 1]
            pat = patches[l]

            ycd = y.astype(compute_dtype)
            if cin_pad > cin:
                # Pad channels to a full sublane tile once per layer so every
                # tap store below is an aligned, unmasked full-tile store.
                ycd = jnp.concatenate(
                    [ycd, jnp.zeros((cin_pad - cin, L), compute_dtype)], axis=0)

            for t, (dh, dw) in enumerate(taps):
                if dh == 0 and dw == 0:
                    win = ycd
                else:
                    shift = (-(dh * W + dw)) % L
                    win = pltpu.roll(ycd, shift, 1) * masks[(dh, dw)]
                pat[t * cin_pad:(t + 1) * cin_pad, :] = win

            # One MXU matmul per layer: (Cout, 9*Cin_pad) @ (9*Cin_pad, NB*HW).
            y = jnp.dot(w_ref[...], pat[...], preferred_element_type=jnp.float32)
            y = jnp.maximum(y + b_ref[...], 0.0)          # bias + ReLU (f32)

        for n in range(NB):
            o_ref[n] = y[:, n * HW:(n + 1) * HW].astype(o_ref.dtype)

    return kernel


def sequential_convs(x_nchw, params, *, compute_dtype=jnp.float32,
                     images_per_step=None):
    """Fused forward of SequentialConvs: n x [conv3x3(pad=1)+bias -> ReLU].

    x_nchw: (N, C0, H, W) float32 (PyTorch layout).
    params: list of (w_oihw (Cl, Cl-1, 3, 3), b (Cl,)).
    Returns (N, Cn, H, W).  Single pallas_call; intermediate activation stays
    in VMEM.  Set compute_dtype=jnp.bfloat16 on v6e/v7x (accumulation stays
    f32, but relax test tolerances accordingly).
    """
    N, c0, H, W = x_nchw.shape
    HW = H * W
    chans = [c0] + [w.shape[0] for w, _ in params]
    sub = _sublane(compute_dtype)
    chans_pad = [_round_up(c, sub) for c in chans]

    NB = _pick_images_per_step(N) if images_per_step is None else images_per_step
    assert N % NB == 0, "images_per_step must divide N"
    G = N // NB
    L = NB * HW

    x_flat = x_nchw.reshape(N, c0, HW).astype(compute_dtype)   # lane-dense input
    inputs = [x_flat]
    in_specs = [pl.BlockSpec((NB, c0, HW), lambda g: (g, 0, 0))]
    scratch = []
    for l, (w, b) in enumerate(params):
        cin, cin_pad, cout = chans[l], chans_pad[l], chans[l + 1]
        # OIHW -> (Cout, 9*Cin_pad); K index = (kh*3 + kw)*Cin_pad + i, with the
        # padded channel tail zero so it matches the zero-padded patch rows.
        w_t = jnp.transpose(w, (0, 2, 3, 1))                    # (O, kh, kw, I)
        if cin_pad > cin:
            w_t = jnp.pad(w_t, ((0, 0), (0, 0), (0, 0), (0, cin_pad - cin)))
        w_flat = w_t.reshape(cout, 9 * cin_pad).astype(compute_dtype)
        inputs += [w_flat, b.reshape(cout, 1).astype(jnp.float32)]
        # Constant-index weight/bias blocks stay resident in VMEM across steps.
        # (pl.Buffered(1) would halve their VMEM on v7x once they grow; omitted
        #  here since they are tiny at these channel counts.)
        in_specs += [pl.BlockSpec((cout, 9 * cin_pad), lambda g: (0, 0)),
                     pl.BlockSpec((cout, 1), lambda g: (0, 0))]
        scratch.append(pltpu.VMEM((9 * cin_pad, L), compute_dtype))   # im2col

    out = pl.pallas_call(
        _make_fused_kernel(H, W, NB, chans, chans_pad, compute_dtype),
        out_shape=jax.ShapeDtypeStruct((N, chans[-1], HW), x_nchw.dtype),
        grid_spec=pltpu.PrefetchScalarGridSpec(
            num_scalar_prefetch=0,
            grid=(G,),
            in_specs=in_specs,
            out_specs=pl.BlockSpec((NB, chans[-1], HW), lambda g: (g, 0, 0)),
            scratch_shapes=scratch,
        ),
        compiler_params=pltpu.CompilerParams(
            dimension_semantics=("parallel",)),
    )(*inputs)
    return out.reshape(N, chans[-1], H, W)                     # free HBM reshape


def init_params(key, in_channels, out_channels, n_convs=2, k=3):
    """Deterministic PyTorch-style init; weights kept in OIHW."""
    params = []
    cin = in_channels
    for _ in range(n_convs):
        key, kw_, kb_ = jax.random.split(key, 3)
        bound = 1.0 / float(cin * k * k) ** 0.5
        w = jax.random.uniform(kw_, (out_channels, cin, k, k),
                               jnp.float32, -bound, bound)
        b = jax.random.uniform(kb_, (out_channels,), jnp.float32, -bound, bound)
        params.append((w, b))
        cin = out_channels
    return params


def _reference(x_nchw, params):
    """Pure-JAX reference (lax conv, NCHW/OIHW like PyTorch)."""
    y = x_nchw
    for w, b in params:
        y = lax.conv_general_dilated(
            y, w, window_strides=(1, 1), padding=((1, 1), (1, 1)),
            dimension_numbers=("NCHW", "OIHW", "NCHW"))
        y = jnp.maximum(y + b[None, :, None, None], 0.0)
    return y


if __name__ == "__main__":
    key = jax.random.PRNGKey(0)
    k_x, k_p, k_x2 = jax.random.split(key, 3)

    N, Cin, H, W = 2, 4, 16, 16
    Cout = 8
    x = jax.random.normal(k_x, (N, Cin, H, W), jnp.float32)   # NCHW, like PyTorch
    params = init_params(k_p, Cin, Cout, n_convs=2)

    fwd = jax.jit(sequential_convs)
    out = jax.block_until_ready(fwd(x, params))
    ref = _reference(x, params)
    assert out.shape == (N, Cout, H, W)
    assert jnp.allclose(out, ref, atol=1e-3, rtol=1e-3), \
        float(jnp.max(jnp.abs(out - ref)))

    # Also exercise the multi-image-per-step path (NB=2, grid=(2,)).
    x2 = jax.random.normal(k_x2, (4, Cin, H, W), jnp.float32)
    out2 = jax.block_until_ready(fwd(x2, params))
    ref2 = _reference(x2, params)
    assert jnp.allclose(out2, ref2, atol=1e-3, rtol=1e-3), \
        float(jnp.max(jnp.abs(out2 - ref2)))

    print("KERNEL_OK")
</pallas_src>

<mosaic_0001>
module attributes {stable_mosaic.version = 11 : i64} {
  func.func @kernel(%arg0: i32, %arg1: memref<1x4x256xf32, #tpu.memory_space<vmem>>, %arg2: memref<8x72xf32, #tpu.memory_space<vmem>>, %arg3: memref<8x1xf32, #tpu.memory_space<vmem>>, %arg4: memref<8x72xf32, #tpu.memory_space<vmem>>, %arg5: memref<8x1xf32, #tpu.memory_space<vmem>>, %arg6: memref<1x8x256xf32, #tpu.memory_space<vmem>>, %arg7: memref<72x256xf32, #tpu.memory_space<vmem>>, %arg8: memref<72x256xf32, #tpu.memory_space<vmem>>) attributes {dimension_semantics = [#tpu.dimension_semantics<parallel>], iteration_bounds = array<i64: 2>, scalar_prefetch = 0 : i64, scratch_operands = 2 : i64, tpu.core_type = #tpu.core_type<tc>, window_params = [{transform_indices = @transform_0, window_bounds = array<i64: 1, 4, 256>}, {pipeline_mode = #tpu.pipeline_mode<synchronous>, transform_indices = @transform_1, window_bounds = array<i64: 8, 72>}, {pipeline_mode = #tpu.pipeline_mode<synchronous>, transform_indices = @transform_2, window_bounds = array<i64: 8, 1>}, {pipeline_mode = #tpu.pipeline_mode<synchronous>, transform_indices = @transform_3, window_bounds = array<i64: 8, 72>}, {pipeline_mode = #tpu.pipeline_mode<synchronous>, transform_indices = @transform_4, window_bounds = array<i64: 8, 1>}, {transform_indices = @transform_5, window_bounds = array<i64: 1, 8, 256>}]} {
    %0 = tpu.iota {dimensions = array<i32: 1>} : vector<1x256xi32>
    %c256_i32 = arith.constant 256 : i32
    %c0_i32 = arith.constant 0 : i32
    %1 = arith.cmpi eq, %c256_i32, %c0_i32 : i32
    %c1_i32 = arith.constant 1 : i32
    %2 = arith.select %1, %c1_i32, %c256_i32 : i32
    %3 = vector.broadcast %2 : i32 to vector<1x256xi32>
    %4 = arith.remsi %0, %3 : vector<1x256xi32>
    %c0_i32_0 = arith.constant 0 : i32
    %5 = vector.broadcast %c0_i32_0 : i32 to vector<1x256xi32>
    %6 = arith.cmpi ne, %4, %5 : vector<1x256xi32>
    %c0_i32_1 = arith.constant 0 : i32
    %7 = vector.broadcast %c0_i32_1 : i32 to vector<1x256xi32>
    %8 = arith.cmpi slt, %4, %7 : vector<1x256xi32>
    %c0_i32_2 = arith.constant 0 : i32
    %9 = arith.cmpi slt, %2, %c0_i32_2 : i32
    %10 = vector.broadcast %9 : i1 to vector<1x256xi1>
    %11 = vector.broadcast %10 : vector<1x256xi1> to vector<1x256xi1>
    %12 = arith.xori %8, %11 : vector<1x256xi1>
    %13 = arith.andi %12, %6 : vector<1x256xi1>
    %14 = vector.broadcast %2 : i32 to vector<1x256xi32>
    %15 = arith.addi %4, %14 : vector<1x256xi32>
    %16 = arith.select %13, %15, %4 : vector<1x256xi1>, vector<1x256xi32>
    %c16_i32 = arith.constant 16 : i32
    %c0_i32_3 = arith.constant 0 : i32
    %17 = arith.cmpi eq, %c16_i32, %c0_i32_3 : i32
    %c1_i32_4 = arith.constant 1 : i32
    %18 = arith.select %17, %c1_i32_4, %c16_i32 : i32
    %19 = vector.broadcast %18 : i32 to vector<1x256xi32>
    %20 = arith.remsi %0, %19 : vector<1x256xi32>
    %c0_i32_5 = arith.constant 0 : i32
    %21 = vector.broadcast %c0_i32_5 : i32 to vector<1x256xi32>
    %22 = arith.cmpi ne, %20, %21 : vector<1x256xi32>
    %c0_i32_6 = arith.constant 0 : i32
    %23 = vector.broadcast %c0_i32_6 : i32 to vector<1x256xi32>
    %24 = arith.cmpi slt, %20, %23 : vector<1x256xi32>
    %c0_i32_7 = arith.constant 0 : i32
    %25 = arith.cmpi slt, %18, %c0_i32_7 : i32
    %26 = vector.broadcast %25 : i1 to vector<1x256xi1>
    %27 = vector.broadcast %26 : vector<1x256xi1> to vector<1x256xi1>
    %28 = arith.xori %24, %27 : vector<1x256xi1>
    %29 = arith.andi %28, %22 : vector<1x256xi1>
    %30 = vector.broadcast %18 : i32 to vector<1x256xi32>
    %31 = arith.addi %20, %30 : vector<1x256xi32>
    %32 = arith.select %29, %31, %20 : vector<1x256xi1>, vector<1x256xi32>
    %true = arith.constant true
    %33 = vector.broadcast %true : i1 to vector<1x256xi1>
    %c16_i32_8 = arith.constant 16 : i32
    %34 = vector.broadcast %c16_i32_8 : i32 to vector<1x256xi32>
    %35 = arith.cmpi sge, %16, %34 : vector<1x256xi32>
    %c0_i32_9 = arith.constant 0 : i32
    %36 = vector.broadcast %c0_i32_9 : i32 to vector<1x256xi32>
    %37 = arith.cmpi sgt, %32, %36 : vector<1x256xi32>
    %38 = arith.andi %35, %37 : vector<1x256xi1>
    %39 = arith.extui %38 : vector<1x256xi1> to vector<1x256xi32>
    %40 = arith.sitofp %39 : vector<1x256xi32> to vector<1x256xf32>
    %c16_i32_10 = arith.constant 16 : i32
    %41 = vector.broadcast %c16_i32_10 : i32 to vector<1x256xi32>
    %42 = arith.cmpi sge, %16, %41 : vector<1x256xi32>
    %43 = arith.andi %42, %33 : vector<1x256xi1>
    %44 = arith.extui %43 : vector<1x256xi1> to vector<1x256xi32>
    %45 = arith.sitofp %44 : vector<1x256xi32> to vector<1x256xf32>
    %c16_i32_11 = arith.constant 16 : i32
    %46 = vector.broadcast %c16_i32_11 : i32 to vector<1x256xi32>
    %47 = arith.cmpi sge, %16, %46 : vector<1x256xi32>
    %c15_i32 = arith.constant 15 : i32
    %48 = vector.broadcast %c15_i32 : i32 to vector<1x256xi32>
    %49 = arith.cmpi slt, %32, %48 : vector<1x256xi32>
    %50 = arith.andi %47, %49 : vector<1x256xi1>
    %51 = arith.extui %50 : vector<1x256xi1> to vector<1x256xi32>
    %52 = arith.sitofp %51 : vector<1x256xi32> to vector<1x256xf32>
    %c0_i32_12 = arith.constant 0 : i32
    %53 = vector.broadcast %c0_i32_12 : i32 to vector<1x256xi32>
    %54 = arith.cmpi sgt, %32, %53 : vector<1x256xi32>
    %55 = arith.andi %33, %54 : vector<1x256xi1>
    %56 = arith.extui %55 : vector<1x256xi1> to vector<1x256xi32>
    %57 = arith.sitofp %56 : vector<1x256xi32> to vector<1x256xf32>
    %c15_i32_13 = arith.constant 15 : i32
    %58 = vector.broadcast %c15_i32_13 : i32 to vector<1x256xi32>
    %59 = arith.cmpi slt, %32, %58 : vector<1x256xi32>
    %60 = arith.andi %33, %59 : vector<1x256xi1>
    %61 = arith.extui %60 : vector<1x256xi1> to vector<1x256xi32>
    %62 = arith.sitofp %61 : vector<1x256xi32> to vector<1x256xf32>
    %c240_i32 = arith.constant 240 : i32
    %63 = vector.broadcast %c240_i32 : i32 to vector<1x256xi32>
    %64 = arith.cmpi slt, %16, %63 : vector<1x256xi32>
    %c0_i32_14 = arith.constant 0 : i32
    %65 = vector.broadcast %c0_i32_14 : i32 to vector<1x256xi32>
    %66 = arith.cmpi sgt, %32, %65 : vector<1x256xi32>
    %67 = arith.andi %64, %66 : vector<1x256xi1>
    %68 = arith.extui %67 : vector<1x256xi1> to vector<1x256xi32>
    %69 = arith.sitofp %68 : vector<1x256xi32> to vector<1x256xf32>
    %c240_i32_15 = arith.constant 240 : i32
    %70 = vector.broadcast %c240_i32_15 : i32 to vector<1x256xi32>
    %71 = arith.cmpi slt, %16, %70 : vector<1x256xi32>
    %72 = arith.andi %71, %33 : vector<1x256xi1>
    %73 = arith.extui %72 : vector<1x256xi1> to vector<1x256xi32>
    %74 = arith.sitofp %73 : vector<1x256xi32> to vector<1x256xf32>
    %c240_i32_16 = arith.constant 240 : i32
    %75 = vector.broadcast %c240_i32_16 : i32 to vector<1x256xi32>
    %76 = arith.cmpi slt, %16, %75 : vector<1x256xi32>
    %c15_i32_17 = arith.constant 15 : i32
    %77 = vector.broadcast %c15_i32_17 : i32 to vector<1x256xi32>
    %78 = arith.cmpi slt, %32, %77 : vector<1x256xi32>
    %79 = arith.andi %76, %78 : vector<1x256xi1>
    %80 = arith.extui %79 : vector<1x256xi1> to vector<1x256xi32>
    %81 = arith.sitofp %80 : vector<1x256xi32> to vector<1x256xf32>
    %c0 = arith.constant 0 : index
    %c0_18 = arith.constant 0 : index
    %c0_19 = arith.constant 0 : index
    %82 = vector.load %arg1[%c0, %c0_18, %c0_19] : memref<1x4x256xf32, #tpu.memory_space<vmem>>, vector<1x4x256xf32>
    %83 = vector.shape_cast %82 : vector<1x4x256xf32> to vector<4x256xf32>
    %cst = arith.constant 0.000000e+00 : f32
    %84 = vector.broadcast %cst : f32 to vector<4x256xf32>
    %85 = tpu.concatenate %83, %84 in 0 : vector<4x256xf32>, vector<4x256xf32> -> vector<8x256xf32>
    %c17_i32 = arith.constant 17 : i32
    %86 = tpu.dynamic_rotate %85 by %c17_i32 dim 1 : vector<8x256xf32>, i32 -> vector<8x256xf32>
    %87 = vector.broadcast %40 : vector<1x256xf32> to vector<8x256xf32>
    %88 = arith.mulf %86, %87 : vector<8x256xf32>
    %c0_20 = arith.constant 0 : index
    %c0_21 = arith.constant 0 : index
    %89 = vector.load %arg7[%c0_20, %c0_21] : memref<72x256xf32, #tpu.memory_space<vmem>>, vector<8x256xf32>
    tpu.vector_store %arg7[%c0_20, %c0_21], %88 {strides = array<i32>} : memref<72x256xf32, #tpu.memory_space<vmem>>, vector<8x256xf32>,
    %c16_i32_22 = arith.constant 16 : i32
    %90 = tpu.dynamic_rotate %85 by %c16_i32_22 dim 1 : vector<8x256xf32>, i32 -> vector<8x256xf32>
    %91 = vector.broadcast %45 : vector<1x256xf32> to vector<8x256xf32>
    %92 = arith.mulf %90, %91 : vector<8x256xf32>
    %c8 = arith.constant 8 : index
    %c0_23 = arith.constant 0 : index
    %93 = vector.load %arg7[%c8, %c0_23] : memref<72x256xf32, #tpu.memory_space<vmem>>, vector<8x256xf32>
    tpu.vector_store %arg7[%c8, %c0_23], %92 {strides = array<i32>} : memref<72x256xf32, #tpu.memory_space<vmem>>, vector<8x256xf32>,
    %c15_i32_24 = arith.constant 15 : i32
    %94 = tpu.dynamic_rotate %85 by %c15_i32_24 dim 1 : vector<8x256xf32>, i32 -> vector<8x256xf32>
    %95 = vector.broadcast %52 : vector<1x256xf32> to vector<8x256xf32>
    %96 = arith.mulf %94, %95 : vector<8x256xf32>
    %c16 = arith.constant 16 : index
    %c0_25 = arith.constant 0 : index
    %97 = vector.load %arg7[%c16, %c0_25] : memref<72x256xf32, #tpu.memory_space<vmem>>, vector<8x256xf32>
    tpu.vector_store %arg7[%c16, %c0_25], %96 {strides = array<i32>} : memref<72x256xf32, #tpu.memory_space<vmem>>, vector<8x256xf32>,
    %c1_i32_26 = arith.constant 1 : i32
    %98 = tpu.dynamic_rotate %85 by %c1_i32_26 dim 1 : vector<8x256xf32>, i32 -> vector<8x256xf32>
    %99 = vector.broadcast %57 : vector<1x256xf32> to vector<8x256xf32>
    %100 = arith.mulf %98, %99 : vector<8x256xf32>
    %c24 = arith.constant 24 : index
    %c0_27 = arith.constant 0 : index
    %101 = vector.load %arg7[%c24, %c0_27] : memref<72x256xf32, #tpu.memory_space<vmem>>, vector<8x256xf32>
    tpu.vector_store %arg7[%c24, %c0_27], %100 {strides = array<i32>} : memref<72x256xf32, #tpu.memory_space<vmem>>, vector<8x256xf32>,
    %c32 = arith.constant 32 : index
    %c0_28 = arith.constant 0 : index
    %102 = vector.load %arg7[%c32, %c0_28] : memref<72x256xf32, #tpu.memory_space<vmem>>, vector<8x256xf32>
    tpu.vector_store %arg7[%c32, %c0_28], %85 {strides = array<i32>} : memref<72x256xf32, #tpu.memory_space<vmem>>, vector<8x256xf32>,
    %c255_i32 = arith.constant 255 : i32
    %103 = tpu.dynamic_rotate %85 by %c255_i32 dim 1 : vector<8x256xf32>, i32 -> vector<8x256xf32>
    %104 = vector.broadcast %62 : vector<1x256xf32> to vector<8x256xf32>
    %105 = arith.mulf %103, %104 : vector<8x256xf32>
    %c40 = arith.constant 40 : index
    %c0_29 = arith.constant 0 : index
    %106 = vector.load %arg7[%c40, %c0_29] : memref<72x256xf32, #tpu.memory_space<vmem>>, vector<8x256xf32>
    tpu.vector_store %arg7[%c40, %c0_29], %105 {strides = array<i32>} : memref<72x256xf32, #tpu.memory_space<vmem>>, vector<8x256xf32>,
    %c241_i32 = arith.constant 241 : i32
    %107 = tpu.dynamic_rotate %85 by %c241_i32 dim 1 : vector<8x256xf32>, i32 -> vector<8x256xf32>
    %108 = vector.broadcast %69 : vector<1x256xf32> to vector<8x256xf32>
    %109 = arith.mulf %107, %108 : vector<8x256xf32>
    %c48 = arith.constant 48 : index
    %c0_30 = arith.constant 0 : index
    %110 = vector.load %arg7[%c48, %c0_30] : memref<72x256xf32, #tpu.memory_space<vmem>>, vector<8x256xf32>
    tpu.vector_store %arg7[%c48, %c0_30], %109 {strides = array<i32>} : memref<72x256xf32, #tpu.memory_space<vmem>>, vector<8x256xf32>,
    %c240_i32_31 = arith.constant 240 : i32
    %111 = tpu.dynamic_rotate %85 by %c240_i32_31 dim 1 : vector<8x256xf32>, i32 -> vector<8x256xf32>
    %112 = vector.broadcast %74 : vector<1x256xf32> to vector<8x256xf32>
    %113 = arith.mulf %111, %112 : vector<8x256xf32>
    %c56 = arith.constant 56 : index
    %c0_32 = arith.constant 0 : index
    %114 = vector.load %arg7[%c56, %c0_32] : memref<72x256xf32, #tpu.memory_space<vmem>>, vector<8x256xf32>
    tpu.vector_store %arg7[%c56, %c0_32], %113 {strides = array<i32>} : memref<72x256xf32, #tpu.memory_space<vmem>>, vector<8x256xf32>,
    %c239_i32 = arith.constant 239 : i32
    %115 = tpu.dynamic_rotate %85 by %c239_i32 dim 1 : vector<8x256xf32>, i32 -> vector<8x256xf32>
    %116 = vector.broadcast %81 : vector<1x256xf32> to vector<8x256xf32>
    %117 = arith.mulf %115, %116 : vector<8x256xf32>
    %c64 = arith.constant 64 : index
    %c0_33 = arith.constant 0 : index
    %118 = vector.load %arg7[%c64, %c0_33] : memref<72x256xf32, #tpu.memory_space<vmem>>, vector<8x256xf32>
    tpu.vector_store %arg7[%c64, %c0_33], %117 {strides = array<i32>} : memref<72x256xf32, #tpu.memory_space<vmem>>, vector<8x256xf32>,
    %c0_34 = arith.constant 0 : index
    %c0_35 = arith.constant 0 : index
    %119 = vector.load %arg2[%c0_34, %c0_35] : memref<8x72xf32, #tpu.memory_space<vmem>>, vector<8x72xf32>
    %c0_36 = arith.constant 0 : index
    %c0_37 = arith.constant 0 : index
    %120 = vector.load %arg7[%c0_36, %c0_37] : memref<72x256xf32, #tpu.memory_space<vmem>>, vector<72x256xf32>
    %cst_38 = arith.constant dense<0.000000e+00> : vector<8x256xf32>
    %121 = tpu.matmul %119, %120, %cst_38 {dimension_numbers = #tpu.dot_dimension_numbers<[1], [0], [0], [1], [0, 0, 1, 1], [], []>} : vector<8x72xf32>, vector<72x256xf32>, vector<8x256xf32> -> vector<8x256xf32>
    %c0_39 = arith.constant 0 : index
    %c0_40 = arith.constant 0 : index
    %122 = vector.load %arg3[%c0_39, %c0_40] : memref<8x1xf32, #tpu.memory_space<vmem>>, vector<8x1xf32>
    %123 = vector.broadcast %122 : vector<8x1xf32> to vector<8x256xf32>
    %124 = arith.addf %121, %123 : vector<8x256xf32>
    %cst_41 = arith.constant 0.000000e+00 : f32
    %125 = vector.broadcast %cst_41 : f32 to vector<8x256xf32>
    %126 = arith.maximumf %124, %125 : vector<8x256xf32>
    %c17_i32_42 = arith.constant 17 : i32
    %127 = tpu.dynamic_rotate %126 by %c17_i32_42 dim 1 : vector<8x256xf32>, i32 -> vector<8x256xf32>
    %128 = vector.broadcast %40 : vector<1x256xf32> to vector<8x256xf32>
    %129 = arith.mulf %127, %128 : vector<8x256xf32>
    %c0_43 = arith.constant 0 : index
    %c0_44 = arith.constant 0 : index
    %130 = vector.load %arg8[%c0_43, %c0_44] : memref<72x256xf32, #tpu.memory_space<vmem>>, vector<8x256xf32>
    tpu.vector_store %arg8[%c0_43, %c0_44], %129 {strides = array<i32>} : memref<72x256xf32, #tpu.memory_space<vmem>>, vector<8x256xf32>,
    %c16_i32_45 = arith.constant 16 : i32
    %131 = tpu.dynamic_rotate %126 by %c16_i32_45 dim 1 : vector<8x256xf32>, i32 -> vector<8x256xf32>
    %132 = vector.broadcast %45 : vector<1x256xf32> to vector<8x256xf32>
    %133 = arith.mulf %131, %132 : vector<8x256xf32>
    %c8_46 = arith.constant 8 : index
    %c0_47 = arith.constant 0 : index
    %134 = vector.load %arg8[%c8_46, %c0_47] : memref<72x256xf32, #tpu.memory_space<vmem>>, vector<8x256xf32>
    tpu.vector_store %arg8[%c8_46, %c0_47], %133 {strides = array<i32>} : memref<72x256xf32, #tpu.memory_space<vmem>>, vector<8x256xf32>,
    %c15_i32_48 = arith.constant 15 : i32
    %135 = tpu.dynamic_rotate %126 by %c15_i32_48 dim 1 : vector<8x256xf32>, i32 -> vector<8x256xf32>
    %136 = vector.broadcast %52 : vector<1x256xf32> to vector<8x256xf32>
    %137 = arith.mulf %135, %136 : vector<8x256xf32>
    %c16_49 = arith.constant 16 : index
    %c0_50 = arith.constant 0 : index
    %138 = vector.load %arg8[%c16_49, %c0_50] : memref<72x256xf32, #tpu.memory_space<vmem>>, vector<8x256xf32>
    tpu.vector_store %arg8[%c16_49, %c0_50], %137 {strides = array<i32>} : memref<72x256xf32, #tpu.memory_space<vmem>>, vector<8x256xf32>,
    %c1_i32_51 = arith.constant 1 : i32
    %139 = tpu.dynamic_rotate %126 by %c1_i32_51 dim 1 : vector<8x256xf32>, i32 -> vector<8x256xf32>
    %140 = vector.broadcast %57 : vector<1x256xf32> to vector<8x256xf32>
    %141 = arith.mulf %139, %140 : vector<8x256xf32>
    %c24_52 = arith.constant 24 : index
    %c0_53 = arith.constant 0 : index
    %142 = vector.load %arg8[%c24_52, %c0_53] : memref<72x256xf32, #tpu.memory_space<vmem>>, vector<8x256xf32>
    tpu.vector_store %arg8[%c24_52, %c0_53], %141 {strides = array<i32>} : memref<72x256xf32, #tpu.memory_space<vmem>>, vector<8x256xf32>,
    %c32_54 = arith.constant 32 : index
    %c0_55 = arith.constant 0 : index
    %143 = vector.load %arg8[%c32_54, %c0_55] : memref<72x256xf32, #tpu.memory_space<vmem>>, vector<8x256xf32>
    tpu.vector_store %arg8[%c32_54, %c0_55], %126 {strides = array<i32>} : memref<72x256xf32, #tpu.memory_space<vmem>>, vector<8x256xf32>,
    %c255_i32_56 = arith.constant 255 : i32
    %144 = tpu.dynamic_rotate %126 by %c255_i32_56 dim 1 : vector<8x256xf32>, i32 -> vector<8x256xf32>
    %145 = vector.broadcast %62 : vector<1x256xf32> to vector<8x256xf32>
    %146 = arith.mulf %144, %145 : vector<8x256xf32>
    %c40_57 = arith.constant 40 : index
    %c0_58 = arith.constant 0 : index
    %147 = vector.load %arg8[%c40_57, %c0_58] : memref<72x256xf32, #tpu.memory_space<vmem>>, vector<8x256xf32>
    tpu.vector_store %arg8[%c40_57, %c0_58], %146 {strides = array<i32>} : memref<72x256xf32, #tpu.memory_space<vmem>>, vector<8x256xf32>,
    %c241_i32_59 = arith.constant 241 : i32
    %148 = tpu.dynamic_rotate %126 by %c241_i32_59 dim 1 : vector<8x256xf32>, i32 -> vector<8x256xf32>
    %149 = vector.broadcast %69 : vector<1x256xf32> to vector<8x256xf32>
    %150 = arith.mulf %148, %149 : vector<8x256xf32>
    %c48_60 = arith.constant 48 : index
    %c0_61 = arith.constant 0 : index
    %151 = vector.load %arg8[%c48_60, %c0_61] : memref<72x256xf32, #tpu.memory_space<vmem>>, vector<8x256xf32>
    tpu.vector_store %arg8[%c48_60, %c0_61], %150 {strides = array<i32>} : memref<72x256xf32, #tpu.memory_space<vmem>>, vector<8x256xf32>,
    %c240_i32_62 = arith.constant 240 : i32
    %152 = tpu.dynamic_rotate %126 by %c240_i32_62 dim 1 : vector<8x256xf32>, i32 -> vector<8x256xf32>
    %153 = vector.broadcast %74 : vector<1x256xf32> to vector<8x256xf32>
    %154 = arith.mulf %152, %153 : vector<8x256xf32>
    %c56_63 = arith.constant 56 : index
    %c0_64 = arith.constant 0 : index
    %155 = vector.load %arg8[%c56_63, %c0_64] : memref<72x256xf32, #tpu.memory_space<vmem>>, vector<8x256xf32>
    tpu.vector_store %arg8[%c56_63, %c0_64], %154 {strides = array<i32>} : memref<72x256xf32, #tpu.memory_space<vmem>>, vector<8x256xf32>,
    %c239_i32_65 = arith.constant 239 : i32
    %156 = tpu.dynamic_rotate %126 by %c239_i32_65 dim 1 : vector<8x256xf32>, i32 -> vector<8x256xf32>
    %157 = vector.broadcast %81 : vector<1x256xf32> to vector<8x256xf32>
    %158 = arith.mulf %156, %157 : vector<8x256xf32>
    %c64_66 = arith.constant 64 : index
    %c0_67 = arith.constant 0 : index
    %159 = vector.load %arg8[%c64_66, %c0_67] : memref<72x256xf32, #tpu.memory_space<vmem>>, vector<8x256xf32>
    tpu.vector_store %arg8[%c64_66, %c0_67], %158 {strides = array<i32>} : memref<72x256xf32, #tpu.memory_space<vmem>>, vector<8x256xf32>,
    %c0_68 = arith.constant 0 : index
    %c0_69 = arith.constant 0 : index
    %160 = vector.load %arg4[%c0_68, %c0_69] : memref<8x72xf32, #tpu.memory_space<vmem>>, vector<8x72xf32>
    %c0_70 = arith.constant 0 : index
    %c0_71 = arith.constant 0 : index
    %161 = vector.load %arg8[%c0_70, %c0_71] : memref<72x256xf32, #tpu.memory_space<vmem>>, vector<72x256xf32>
    %cst_72 = arith.constant dense<0.000000e+00> : vector<8x256xf32>
    %162 = tpu.matmul %160, %161, %cst_72 {dimension_numbers = #tpu.dot_dimension_numbers<[1], [0], [0], [1], [0, 0, 1, 1], [], []>} : vector<8x72xf32>, vector<72x256xf32>, vector<8x256xf32> -> vector<8x256xf32>
    %c0_73 = arith.constant 0 : index
    %c0_74 = arith.constant 0 : index
    %163 = vector.load %arg5[%c0_73, %c0_74] : memref<8x1xf32, #tpu.memory_space<vmem>>, vector<8x1xf32>
    %164 = vector.broadcast %163 : vector<8x1xf32> to vector<8x256xf32>
    %165 = arith.addf %162, %164 : vector<8x256xf32>
    %cst_75 = arith.constant 0.000000e+00 : f32
    %166 = vector.broadcast %cst_75 : f32 to vector<8x256xf32>
    %167 = arith.maximumf %165, %166 : vector<8x256xf32>
    %c0_76 = arith.constant 0 : index
    %c0_77 = arith.constant 0 : index
    %c0_78 = arith.constant 0 : index
    %168 = vector.load %arg6[%c0_76, %c0_77, %c0_78] : memref<1x8x256xf32, #tpu.memory_space<vmem>>, vector<1x8x256xf32>
    %169 = vector.shape_cast %168 : vector<1x8x256xf32> to vector<8x256xf32>
    %170 = vector.shape_cast %167 : vector<8x256xf32> to vector<1x8x256xf32>
    tpu.vector_store %arg6[%c0_76, %c0_77, %c0_78], %170 {strides = array<i32>} : memref<1x8x256xf32, #tpu.memory_space<vmem>>, vector<1x8x256xf32>,
    return
  }
  func.func @transform_0(%arg0: i32) -> (i32, i32, i32) {
    %c0_i32 = arith.constant 0 : i32
    %c0_i32_0 = arith.constant 0 : i32
    %c0_i32_1 = arith.constant 0 : i32
    return %arg0, %c0_i32, %c0_i32_0 : i32, i32, i32
  }
  func.func @transform_1(%arg0: i32) -> (i32, i32) {
    %c0_i32 = arith.constant 0 : i32
    %c0_i32_0 = arith.constant 0 : i32
    %c0_i32_1 = arith.constant 0 : i32
    return %c0_i32, %c0_i32_0 : i32, i32
  }
  func.func @transform_2(%arg0: i32) -> (i32, i32) {
    %c0_i32 = arith.constant 0 : i32
    %c0_i32_0 = arith.constant 0 : i32
    %c0_i32_1 = arith.constant 0 : i32
    return %c0_i32, %c0_i32_0 : i32, i32
  }
  func.func @transform_3(%arg0: i32) -> (i32, i32) {
    %c0_i32 = arith.constant 0 : i32
    %c0_i32_0 = arith.constant 0 : i32
    %c0_i32_1 = arith.constant 0 : i32
    return %c0_i32, %c0_i32_0 : i32, i32
  }
  func.func @transform_4(%arg0: i32) -> (i32, i32) {
    %c0_i32 = arith.constant 0 : i32
    %c0_i32_0 = arith.constant 0 : i32
    %c0_i32_1 = arith.constant 0 : i32
    return %c0_i32, %c0_i32_0 : i32, i32
  }
  func.func @transform_5(%arg0: i32) -> (i32, i32, i32) {
    %c0_i32 = arith.constant 0 : i32
    %c0_i32_0 = arith.constant 0 : i32
    %c0_i32_1 = arith.constant 0 : i32
    return %arg0, %c0_i32, %c0_i32_0 : i32, i32, i32
  }
}

</mosaic_0001>

<bundles_post_ra>
// kernel: sequential_convs.1
= control target key start
LH: loop header
LB: loop body
LE: loop exit
PB: predicated region body
PF: predicated region fallthrough
CT: control target
= control target key end

     0   :  { %s898_s18 = smov 0   ;;  %s1178_s0 = inlined_call_operand.vmem [shape: f32[2,4,256], index: 0, kind: input, shape index: {}]   ;;  %s1179_s1 = inlined_call_operand.vmem [shape: f32[8,72], index: 1, kind: input, shape index: {}]   ;;  %s1180_s2 = inlined_call_operand.vmem [shape: f32[8,1], index: 2, kind: input, shape index: {}]   ;;  %s1181_s3 = inlined_call_operand.vmem [shape: f32[8,72], index: 3, kind: input, shape index: {}]   ;;  %s1182_s4 = inlined_call_operand.vmem [shape: f32[8,1], index: 4, kind: input, shape index: {}]   ;;  %s1183_s5 = inlined_call_operand.vmem [shape: f32[2,8,256], index: 5, kind: output, shape index: {}]  }
   0x1 LB: > { %s763_s19 = sadd.s32 4294967295, %s855_s18   ;;  %p767_p0 = scmp.ge.s32.totalorder %s855_s18, 1  ;;  %s855_s18 = sphi %s898_s18, %s15_s18  }
   0x2   : > { %p187_p1 = scmp.lt.s32.totalorder %s855_s18, 3 }
   0x4   : > { %p188_p2 = pnand %p767_p0, %p187_p1 }
   0x5   : > { %p215_p3 = scmp.lt.s32.totalorder (!%p188_p2), %s763_s19, 1  ;;  %v857_v0 = vmov (!%p188_p2), 0.0   ;;  %vm328_vm0 = vcmask (!%p188_p2), 1043456   ;;  %s858_s24 = smov (!%p188_p2), 16   ;;  %v864_v5 = vmov (!%p188_p2), 0   ;;  %v440_v6 = vld [vmem:[%s1180_s2] sm:$0xff] (!%p188_p2)  ;;  %v225_v7 = vlaneseq (!%p188_p2) }
   0x6   : > { %191 = sbr.rel (%p188_p2) target bundleno = 756 (0x2f4), region = 40  ;;  %514 = vmatprep.mubr.f32.mxu0 (!%p188_p2), %v857_v0  ;;  %697 = vmatprep.mubr.f32.mxu1 (!%p188_p2), %v857_v0  ;;  %s859_s25 = smov (!%p188_p2), 17   ;;  %vm867_vm14 = vmmov (!%p188_p2), 1  }
   0x7   : > { %s860_s26 = smov (!%p188_p2), 15   ;;  %s861_s27 = smov (!%p188_p2), 1   ;;  %847 = vset.pattern.permute.xlu0 (!%p188_p2), %v864_v5  ;;  %v943_v8 = vand.u32 (!%p188_p2), 127, %v225_v7  ;;  %vm803_vm15 = vmpackc.low (!%p188_p2), %vm867_vm14, %vm328_vm0 }
   0x8   : > { %s862_s28 = smov (!%p188_p2), 127   ;;  %s863_s29 = smov (!%p188_p2), 113  }
   0x9   : > { %s865_s30 = smov (!%p188_p2), 112   ;;  %s866_s6 = smov (!%p188_p2), 111   ;;  %v227_v9 = vadd.s32 (!%p188_p2), 128, %v943_v8  ;;  %v256_v10 = vand.u32 (!%p188_p2), 15, %v943_v8  ;;  %v232_v11 = vand.u32 (!%p188_p2), 255, %v943_v8  ;;  %vm346_vm4 = vcmp.lt.s32.totalorder (!%p188_p2), %v943_v8, 16 }
   0xa   : > { %vm335_vm8 = vcmp.lt.s32.totalorder (!%p188_p2), %v943_v8, 17  ;;  %vm357_vm10 = vcmp.lt.s32.totalorder (!%p188_p2), %v943_v8, 15  ;;  %vm368_vm11 = vcmp.lt.s32.totalorder (!%p188_p2), %v943_v8, 1  ;;  %vm381_vm12 = vcmp.lt.s32.totalorder (!%p188_p2), %v943_v8, 127 }
   0xb   : > { %v263_v14 = vand.u32 (!%p188_p2), 15, %v227_v9  ;;  %vm948_vm1 = vcmp.gt.s32.totalorder (!%p188_p2), %v256_v10, 0  ;;  %vm952_vm2 = vcmp.ge.s32.totalorder (!%p188_p2), %v232_v11, 16  ;;  %vm956_vm3 = vcmp.lt.s32.totalorder (!%p188_p2), %v256_v10, 15 }
   0xc   : > { %vm280_vm5 = vmand (!%p188_p2), %vm952_vm2, %vm948_vm1  ;;  %v977_v21 = vsel (!%p188_p2), %vm952_vm2, 1.0, %v857_v0  ;;  %v1004_v31 = vsel (!%p188_p2), %vm948_vm1, 1.0, %v857_v0  ;;  %v239_v45 = vand.u32 (!%p188_p2), 255, %v227_v9  ;;  %v1033_v50 = vsel (!%p188_p2), %vm956_vm3, 1.0, %v857_v0 }
   0xd   : > { %s1197_s19 = smov (!%p215_p3, %s763_s19), 1  ;;  %vm965_vm6 = vcmp.gt.s32.totalorder %v263_v14, 0  ;;  %vm292_vm7 = vmand %vm952_vm2, %vm956_vm3  ;;  %v982_v23 = vsel %vm280_vm5, 1.0, %v857_v0  ;;  %vm989_vm9 = vcmp.lt.s32.totalorder %v263_v14, 15  ;;  %vm392_vm2 = vcmp.lt.s32.totalorder %v943_v8, 113 }
   0xe   : > { %s790_s20 = sshll.u32 %s1197_s19, 3  ;;  %v987_v24 = vsel %vm965_vm6, 1.0, %v857_v0  ;;  %v995_v28 = vsel %vm292_vm7, 1.0, %v857_v0  ;;  %v1013_v35 = vsel %vm989_vm9, 1.0, %v857_v0  ;;  %vm1039_vm13 = vcmp.lt.s32.totalorder %v239_v45, 240  ;;  %s791_s15 = sshll.u32 %s1197_s19, 4 }
   0xf   : > { %s219_s23 = scalar_lea.vmem %s1178_s0, %s790_s20  ;;  %vm309_vm1 = vmand %vm1039_vm13, %vm965_vm6  ;;  %vm403_vm3 = vcmp.lt.s32.totalorder %v943_v8, 112  ;;  %vm414_vm5 = vcmp.lt.s32.totalorder %v943_v8, 111  ;;  %vm446_vm6 = vcmask 588800   ;;  %s224_s20 = scalar_lea.vmem %s1183_s5, %s791_s15 }
  0x10   : > { %v914_v1 = vld [vmem:[%s219_s23] sm:$0xff] }
  0x11   : > { %v329_v2 = vsel %vm328_vm0, %v914_v1, 0.0  ;;  %v920_v3 = vcombine.high %v914_v1, %v914_v1 }
  0x12   : > { %342 = vrot.lane.b32.xlu1 %v329_v2, %s858_s24  ;;  %331 = vrot.lane.b32.xlu0 %v329_v2, %s859_s25 }
  0x13   : > { %v330_v4 = vsel %vm328_vm0, %v920_v3, 0.0  ;;  %vm319_vm0 = vmand %vm1039_vm13, %vm989_vm9 }
  0x16   : > { %353 = vrot.lane.b32.xlu0 %v329_v2, %s860_s26  ;;  %344 = vrot.lane.b32.xlu1 %v330_v4, %s858_s24 }
  0x1a   : > { %355 = vrot.lane.b32.xlu1 %v330_v4, %s860_s26  ;;  %333 = vrot.lane.b32.xlu0 %v330_v4, %s859_s25 }
  0x1e   : > { %366 = vrot.lane.b32.xlu1 %v330_v4, %s861_s27  ;;  %364 = vrot.lane.b32.xlu0 %v329_v2, %s861_s27 }
  0x22   : > { %379 = vrot.lane.b32.xlu1 %v330_v4, %s862_s28  ;;  %377 = vrot.lane.b32.xlu0 %v329_v2, %s862_s28 }
  0x26   : > { %390 = vrot.lane.b32.xlu1 %v330_v4, %s863_s29  ;;  %388 = vrot.lane.b32.xlu0 %v329_v2, %s863_s29 }
  0x2a   : > { %401 = vrot.lane.b32.xlu1 %v330_v4, %s865_s30  ;;  %399 = vrot.lane.b32.xlu0 %v329_v2, %s865_s30 }
  0x2e   : > { %412 = vrot.lane.b32.xlu1 %v330_v4, %s866_s6  ;;  %410 = vrot.lane.b32.xlu0 %v329_v2, %s866_s6  ;;  %v1055_v2 = vsel %vm309_vm1, 1.0, %v857_v0 }
  0x32   : > { %443 = vperm.xlu0 %847, %v440_v6  }
  0x84   : > { %v343_v12 = vpop.permute.xlu1 %342  ;;  %v332_v13 = vpop.permute.xlu0 %331 }
  0x88   : > { %v354_v18 = vpop.permute.xlu0 %353  ;;  %v345_v19 = vpop.permute.xlu1 %344 }
  0x89   : > { %v348_v22 = vsel %vm346_vm4, %v345_v19, %v343_v12  ;;  %v347_v38 = vsel %vm346_vm4, %v343_v12, %v345_v19 }
  0x8a   : > { %v349_v32 = vmul.f32 %v977_v21, %v348_v22 }
  0x8c   : > { %v356_v26 = vpop.permute.xlu1 %355  ;;  %v334_v27 = vpop.permute.xlu0 %333 }
  0x8d   : > { %v336_v29 = vsel %vm335_vm8, %v332_v13, %v334_v27  ;;  %v337_v30 = vsel %vm335_vm8, %v334_v27, %v332_v13  ;;  %v358_v36 = vsel %vm357_vm10, %v354_v18, %v356_v26  ;;  %v359_v37 = vsel %vm357_vm10, %v356_v26, %v354_v18 }
  0x8e   : > { %v338_v33 = vmul.f32 %v982_v23, %v337_v30  ;;  %v339_v34 = vmul.f32 %v987_v24, %v336_v29  ;;  %v360_v46 = vmul.f32 %v995_v28, %v359_v37  ;;  %v361_v47 = vmul.f32 %v1013_v35, %v358_v36 }
  0x8f   : > { %v1079_v13 = vsel %vm319_vm0, 1.0, %v857_v0 }
  0x90   : > { %v367_v39 = vpop.permute.xlu1 %366  ;;  %v365_v40 = vpop.permute.xlu0 %364  ;;  %v794_v41 = vpack.c.bf16 %v347_v38, %v339_v34  ;;  %v796_v42 = vpack.c.bf16 %v349_v32, %v338_v33  ;;  %v624_v34 = vld [vmem:[%s1182_s4] sm:$0xff] }
  0x91   : > { %v369_v43 = vsel %vm368_vm11, %v365_v40, %v367_v39  ;;  %v370_v44 = vsel %vm368_vm11, %v367_v39, %v365_v40 }
  0x92   : > { %v371_v48 = vmul.f32 %v1004_v31, %v370_v44  ;;  %v372_v49 = vmul.f32 %v987_v24, %v369_v43  ;;  %795 = vmatprep.subr.bf16.mxu0 %v794_v41 }
  0x93   : > { %797 = vmatpush1.bf16.msra.mxu0 %v796_v42 }
  0x94   : > { %v380_v51 = vpop.permute.xlu1 %379  ;;  %v378_v52 = vpop.permute.xlu0 %377  ;;  %v798_v53 = vpack.c.bf16 %v372_v49, %v361_v47  ;;  %v800_v54 = vpack.c.bf16 %v371_v48, %v360_v46 }
  0x95   : > { %v382_v55 = vsel %vm381_vm12, %v378_v52, %v380_v51  ;;  %v383_v56 = vsel %vm381_vm12, %v380_v51, %v378_v52 }
  0x96   : > { %v384_v58 = vmul.f32 %v1033_v50, %v382_v55  ;;  %v385_v59 = vmul.f32 %v1013_v35, %v383_v56  ;;  %799 = vmatprep.subr.bf16.mxu0 %v798_v53 }
  0x97   : > { %801 = vmatpush1.bf16.msra.mxu0 %v800_v54 }
  0x98   : > { %v802_v60 = vpack.c.bf16 %v385_v59, %v920_v3  ;;  %v805_v61 = vpack.c.bf16 %v384_v58, %v914_v1  ;;  %v391_v62 = vpop.permute.xlu1 %390  ;;  %v389_v63 = vpop.permute.xlu0 %388  ;;  %v1062_v1 = vsel %vm1039_vm13, 1.0, %v857_v0  ;;  %v421_v0 = vld [vmem:[%s1179_s1] sm:$0xff] }
  0x99   : > { %v394_v3 = vsel %vm392_vm2, %v391_v62, %v389_v63  ;;  %v393_v4 = vsel %vm392_vm2, %v389_v63, %v391_v62 }
  0x9a   : > { %804 = vmatprep.subr.msk.bf16.mxu0 %vm803_vm15, %v802_v60  ;;  %v396_v9 = vmul.f32 %v1055_v2, %v394_v3  ;;  %v395_v12 = vmul.f32 %v1004_v31, %v393_v4 }
  0x9b   : > { %807 = vmatpush1.bf16.msk.msra.mxu0 %vm803_vm15, %v805_v61 }
  0x9c   : > { %v402_v5 = vpop.permute.xlu1 %401  ;;  %v400_v6 = vpop.permute.xlu0 %399 }
  0x9d   : > { %v405_v7 = vsel %vm403_vm3, %v402_v5, %v400_v6  ;;  %v404_v10 = vsel %vm403_vm3, %v400_v6, %v402_v5 }
  0x9e   : > { %v407_v11 = vmul.f32 %v1062_v1, %v405_v7  ;;  %v810_v17 = vpack.c.bf16 %v404_v10, %v395_v12 }
  0xa0   : > { %v413_v14 = vpop.permute.xlu1 %412  ;;  %v808_v15 = vpack.c.bf16 %v407_v11, %v396_v9  ;;  %v411_v16 = vpop.permute.xlu0 %410 }
  0xa1   : > { %v415_v18 = vsel %vm414_vm5, %v411_v16, %v413_v14  ;;  %v416_v19 = vsel %vm414_vm5, %v413_v14, %v411_v16 }
  0xa2   : > { %809 = vmatprep.subr.bf16.mxu0 %v808_v15  ;;  %v418_v20 = vmul.f32 %v1079_v13, %v416_v19  ;;  %v417_v22 = vmul.f32 %v1033_v50, %v415_v18 }
  0xa3   : > { %811 = vmatpush1.bf16.msra.mxu0 %v810_v17 }
  0xa4   : > { %466 = vmatprep.subr.mxu0 %v418_v20 }
  0xa7   : > { %467 = vmatpush1.msra.mxu0 %v417_v22 }
  0xa8   : > { %786 = vmatmul.mubr.msk.f32.vlgmr.msra.gmra.mrb[0].mxu0 %vm446_vm6, %v421_v0 }
  0xb1   : > { %v444_v25 = vpop.permute.xlu0 %443 }
 0x17b   : > { %v516_v26 = vpop.f32.mrb[0].mxu0 }
 0x17c   : > { %v517_v27 = vadd.f32 %v516_v26, %v444_v25  ;;  %v518_v29 = vpop.f32.mrb[1].mxu0 }
 0x17d   : > { %v519_v32 = vadd.f32 %v518_v29, %v444_v25 }
 0x17e   : > { %v1091_v30 = vmax.f32 %v517_v27, 0.0 }
 0x17f   : > { %v522_v33 = vmax.f32 %v519_v32, 0.0 }
 0x180   : > { %533 = vrot.lane.b32.xlu0 %v1091_v30, %s858_s24  ;;  %523 = vrot.lane.b32.xlu1 %v1091_v30, %s859_s25 }
 0x184   : > { %543 = vrot.lane.b32.xlu0 %v1091_v30, %s860_s26  ;;  %525 = vrot.lane.b32.xlu1 %v522_v33, %s859_s25 }
 0x188   : > { %553 = vrot.lane.b32.xlu0 %v1091_v30, %s861_s27  ;;  %535 = vrot.lane.b32.xlu1 %v522_v33, %s858_s24 }
 0x18c   : > { %565 = vrot.lane.b32.xlu0 %v1091_v30, %s862_s28  ;;  %545 = vrot.lane.b32.xlu1 %v522_v33, %s860_s26 }
 0x190   : > { %575 = vrot.lane.b32.xlu0 %v1091_v30, %s863_s29  ;;  %555 = vrot.lane.b32.xlu1 %v522_v33, %s861_s27 }
 0x194   : > { %585 = vrot.lane.b32.xlu0 %v1091_v30, %s865_s30  ;;  %567 = vrot.lane.b32.xlu1 %v522_v33, %s862_s28 }
 0x198   : > { %595 = vrot.lane.b32.xlu0 %v1091_v30, %s866_s6  ;;  %577 = vrot.lane.b32.xlu1 %v522_v33, %s863_s29 }
 0x19c   : > { %627 = vperm.xlu0 %847, %v624_v34   ;;  %587 = vrot.lane.b32.xlu1 %v522_v33, %s865_s30 }
 0x1a0   : > { %597 = vrot.lane.b32.xlu1 %v522_v33, %s866_s6 }
 0x1f2   : > { %v534_v36 = vpop.permute.xlu0 %533  ;;  %v524_v37 = vpop.permute.xlu1 %523 }
 0x1f6   : > { %v544_v38 = vpop.permute.xlu0 %543  ;;  %v526_v39 = vpop.permute.xlu1 %525 }
 0x1f7   : > { %v527_v40 = vsel %vm335_vm8, %v524_v37, %v526_v39  ;;  %v528_v41 = vsel %vm335_vm8, %v526_v39, %v524_v37 }
 0x1f8   : > { %v530_v44 = vmul.f32 %v987_v24, %v527_v40  ;;  %v529_v47 = vmul.f32 %v982_v23, %v528_v41 }
 0x1fa   : > { %v554_v42 = vpop.permute.xlu0 %553  ;;  %v536_v43 = vpop.permute.xlu1 %535 }
 0x1fb   : > { %v538_v45 = vsel %vm346_vm4, %v536_v43, %v534_v36  ;;  %v537_v46 = vsel %vm346_vm4, %v534_v36, %v536_v43 }
 0x1fc   : > { %v539_v48 = vmul.f32 %v977_v21, %v538_v45  ;;  %v812_v49 = vpack.c.bf16 %v537_v46, %v530_v44 }
 0x1fe   : > { %813 = vmatprep.subr.bf16.mxu1 %v812_v49  ;;  %v546_v51 = vpop.permute.xlu1 %545  ;;  %v814_v52 = vpack.c.bf16 %v539_v48, %v529_v47  ;;  %v566_v53 = vpop.permute.xlu0 %565 }
 0x1ff   : > { %v547_v54 = vsel %vm357_vm10, %v544_v38, %v546_v51  ;;  %v548_v55 = vsel %vm357_vm10, %v546_v51, %v544_v38 }
 0x200   : > { %815 = vmatpush1.bf16.msra.mxu1 %v814_v52  ;;  %v549_v21 = vmul.f32 %v995_v28, %v548_v55  ;;  %v550_v58 = vmul.f32 %v1013_v35, %v547_v54 }
 0x202   : > { %v556_v56 = vpop.permute.xlu1 %555  ;;  %v576_v61 = vpop.permute.xlu0 %575 }
 0x203   : > { %v557_v57 = vsel %vm368_vm11, %v554_v42, %v556_v56  ;;  %v558_v23 = vsel %vm368_vm11, %v556_v56, %v554_v42 }
 0x204   : > { %v559_v59 = vmul.f32 %v1004_v31, %v558_v23  ;;  %v560_v60 = vmul.f32 %v987_v24, %v557_v57 }
 0x206   : > { %v568_v62 = vpop.permute.xlu1 %567  ;;  %v816_v63 = vpack.c.bf16 %v560_v60, %v550_v58  ;;  %v818_v3 = vpack.c.bf16 %v559_v59, %v549_v21  ;;  %v586_v10 = vpop.permute.xlu0 %585 }
 0x207   : > { %v569_v4 = vsel %vm381_vm12, %v566_v53, %v568_v62  ;;  %v570_v5 = vsel %vm381_vm12, %v568_v62, %v566_v53 }
 0x208   : > { %v571_v6 = vmul.f32 %v1033_v50, %v569_v4  ;;  %v572_v28 = vmul.f32 %v1013_v35, %v570_v5  ;;  %817 = vmatprep.subr.bf16.mxu1 %v816_v63 }
 0x209   : > { %819 = vmatpush1.bf16.msra.mxu1 %v818_v3 }
 0x20a   : > { %v578_v7 = vpop.permute.xlu1 %577  ;;  %v820_v9 = vpack.c.bf16 %v572_v28, %v522_v33  ;;  %v822_v24 = vpack.c.bf16 %v571_v6, %v1091_v30  ;;  %v596_v19 = vpop.permute.xlu0 %595 }
 0x20b   : > { %v580_v11 = vsel %vm392_vm2, %v578_v7, %v576_v61  ;;  %v579_v12 = vsel %vm392_vm2, %v576_v61, %v578_v7 }
 0x20c   : > { %821 = vmatprep.subr.bf16.mxu1 %v820_v9  ;;  %v582_v35 = vmul.f32 %v1055_v2, %v580_v11  ;;  %v581_v18 = vmul.f32 %v1004_v31, %v579_v12  ;;  %v605_v31 = vld [vmem:[%s1181_s3] sm:$0xff] }
 0x20d   : > { %823 = vmatpush1.bf16.msra.mxu1 %v822_v24 }
 0x20e   : > { %v588_v14 = vpop.permute.xlu1 %587 }
 0x20f   : > { %v590_v15 = vsel %vm403_vm3, %v588_v14, %v586_v10  ;;  %v589_v16 = vsel %vm403_vm3, %v586_v10, %v588_v14 }
 0x210   : > { %v592_v17 = vmul.f32 %v1062_v1, %v590_v15  ;;  %v826_v0 = vpack.c.bf16 %v589_v16, %v581_v18 }
 0x212   : > { %v598_v20 = vpop.permute.xlu1 %597  ;;  %v824_v22 = vpack.c.bf16 %v592_v17, %v582_v35 }
 0x213   : > { %v600_v25 = vsel %vm414_vm5, %v598_v20, %v596_v19  ;;  %v599_v26 = vsel %vm414_vm5, %v596_v19, %v598_v20 }
 0x214   : > { %v602_v2 = vmul.f32 %v1079_v13, %v600_v25  ;;  %825 = vmatprep.subr.bf16.mxu1 %v824_v22  ;;  %v601_v1 = vmul.f32 %v1033_v50, %v599_v26 }
 0x215   : > { %827 = vmatpush1.bf16.msra.mxu1 %v826_v0 }
 0x216   : > { %649 = vmatprep.subr.mxu1 %v602_v2 }
 0x219   : > { %650 = vmatpush1.msra.mxu1 %v601_v1 }
 0x21a   : > { %787 = vmatmul.mubr.msk.f32.vlgmr.msra.gmra.mrb[0].mxu1 %vm446_vm6, %v605_v31 }
 0x21b   : > { %v628_v27 = vpop.permute.xlu0 %627 }
 0x2ed   : > { %v699_v29 = vpop.f32.mrb[0].mxu1 }
 0x2ee   : > { %v700_v30 = vadd.f32 %v699_v29, %v628_v27  ;;  %v701_v8 = vpop.f32.mrb[1].mxu1 }
 0x2ef   : > { %v702_v13 = vadd.f32 %v701_v8, %v628_v27 }
 0x2f0   : > { %v704_v32 = vmax.f32 %v700_v30, 0.0 }
 0x2f1   : > { %v705_v33 = vmax.f32 %v702_v13, 0.0 }
 0x2f2   : > { %706 = vst [vmem:[%s224_s20] sm:$0xff] %v704_v32 }
 0x2f3   : > { %707 = vst [vmem:[%s224_s20 + $0x8] sm:$0xff] %v705_v33 }
 0x2f4 PF: > { %s15_s18 = sadd.s32 1, %s855_s18  }
 0x2f5   : > { %p12_p4 = scmp.ge.s32.totalorder %s15_s18, 4  }
 0x2f7   :  { %14 = sbr.rel (!%p12_p4) target bundleno = 1 (0x1), region = 70 }

</bundles_post_ra>
